<compile_context>
chip_gen: v5e
topology: v5e:2x2
jax: 0.10.0
libtpu: 0.0.40
codegen_flags: <defaults>
</compile_context>

<pallas_src>
import functools

import jax
import jax.numpy as jnp
from jax.experimental import pallas as pl
from jax.experimental.pallas import tpu as pltpu

_MIB = 1024 * 1024


def _round_up(n, m):
    return ((n + m - 1) // m) * m


def _cdiv(a, b):
    return (a + b - 1) // b


def _physical_vmem_bytes():
    try:
        return int(pltpu.get_tpu_info().vmem_capacity_bytes)
    except Exception:
        return 64 * _MIB  # conservative fallback (v7x per-TensorCore)


# --------------------------------------------------------------------------- #
# Kernels
# --------------------------------------------------------------------------- #
def _resident_kernel(x_ref, w1_ref, b1_ref, w2_ref, b2_ref, o_ref, *, compute_dtype):
    # block[0]: Linear  (MXU operands in compute_dtype, f32 accumulate)
    h = jnp.dot(x_ref[...].astype(compute_dtype), w1_ref[...],
                preferred_element_type=jnp.float32) + b1_ref[...]
    # block[1]: ReLU
    h = jnp.maximum(h, 0.0)
    # block[2]: Linear
    y = jnp.dot(h.astype(compute_dtype), w2_ref[...],
                preferred_element_type=jnp.float32)
    # Fused epilogue: re-read x here (shorter live range) + bias + residual + ReLU.
    o_ref[...] = jnp.maximum(x_ref[...].astype(jnp.float32) + y + b2_ref[...],
                             0.0).astype(o_ref.dtype)


def _ktiled_kernel(x_ref, w1_ref, b1_ref, w2_ref, b2_ref, o_ref,
                   h_acc, y_acc, *, compute_dtype, tk, n_k):
    k = pl.program_id(1)

    @pl.when(k == 0)
    def _():
        h_acc[...] = jnp.zeros_like(h_acc)
        y_acc[...] = jnp.zeros_like(y_acc)

    # Phase 1 (k in [0, n_k)): h_acc += x[:, k-slab] @ W1[k-slab, :]
    @pl.when(k < n_k)
    def _():
        off = pl.multiple_of(k * tk, tk)
        x_slab = x_ref[:, pl.ds(off, tk)].astype(compute_dtype)
        h_acc[...] += jnp.dot(x_slab, w1_ref[...],
                              preferred_element_type=jnp.float32)

    # End of phase 1: bias + ReLU, in place.
    @pl.when(k == n_k - 1)
    def _():
        h_acc[...] = jnp.maximum(h_acc[...] + b1_ref[...], 0.0)

    # Phase 2 (k in [n_k, 2*n_k)): y_acc += h[:, k-slab] @ W2[k-slab, :]
    @pl.when(k >= n_k)
    def _():
        off = pl.multiple_of((k - n_k) * tk, tk)
        h_slab = h_acc[:, pl.ds(off, tk)].astype(compute_dtype)
        y_acc[...] += jnp.dot(h_slab, w2_ref[...],
                              preferred_element_type=jnp.float32)

    # Finalize: residual + bias + outer ReLU.
    @pl.when(k == 2 * n_k - 1)
    def _():
        o_ref[...] = jnp.maximum(
            x_ref[...].astype(jnp.float32) + y_acc[...] + b2_ref[...],
            0.0).astype(o_ref.dtype)


# --------------------------------------------------------------------------- #
# Wrapper
# --------------------------------------------------------------------------- #
def prepare_params(w1, b1, w2, b2, *, compute_dtype=jnp.bfloat16):
    """Pad weights/biases to a lane-dense Fp (multiple of 128) and cast weights
    to the MXU compute dtype ONCE, so per-call invocations only stream x."""
    F = w1.shape[0]
    Fp = _round_up(max(F, 128), 128)
    b1 = jnp.asarray(b1).reshape(1, -1)
    b2 = jnp.asarray(b2).reshape(1, -1)
    if Fp == F:
        w1_p = w1.astype(compute_dtype)
        w2_p = w2.astype(compute_dtype)
        b1_p = b1.astype(jnp.float32)
        b2_p = b2.astype(jnp.float32)
    else:
        w1_p = jnp.zeros((Fp, Fp), jnp.float32).at[:F, :F].set(w1).astype(compute_dtype)
        w2_p = jnp.zeros((Fp, Fp), jnp.float32).at[:F, :F].set(w2).astype(compute_dtype)
        b1_p = jnp.zeros((1, Fp), jnp.float32).at[:, :F].set(b1)
        b2_p = jnp.zeros((1, Fp), jnp.float32).at[:, :F].set(b2)
    return dict(w1=w1_p, b1=b1_p, w2=w2_p, b2=b2_p,
                size=F, compute_dtype=compute_dtype)


def residual_block_prepared(x, params, *, block_b=None, force_ktiled=False, tk=None):
    """x: [B, F]. params: output of prepare_params."""
    B, F = x.shape
    assert F == params["size"]
    compute_dtype = params["compute_dtype"]
    w1_p, b1_p, w2_p, b2_p = params["w1"], params["b1"], params["w2"], params["b2"]
    Fp = w1_p.shape[0]

    isz_x = jnp.dtype(x.dtype).itemsize
    isz_w = jnp.dtype(compute_dtype).itemsize

    # Bigger batch tiles when the feature dim is small (stream-dominated, HBM
    # roofline), smaller when weights/intermediates dominate VMEM.
    if block_b is None:
        block_b = 512 if Fp <= 1024 else 256

    # >=2 batch tiles when B allows (feeds both TCs on v7x), spread B evenly so
    # batch padding is bounded by <TB rather than up to ~2x.
    n_tiles = max(_cdiv(B, block_b), min(2, _cdiv(B, 8)))
    TB = max(8, _round_up(_cdiv(B, n_tiles), 8))
    Bp = _round_up(B, TB)

    # Only materialize a padded copy of x when actually needed.
    if Bp == B and Fp == F:
        x_p = x
    else:
        x_p = jnp.zeros((Bp, Fp), x.dtype).at[:B, :F].set(x)

    phys_vmem = _physical_vmem_bytes()

    # Resident-path estimate: x/out double-buffered, weights single-buffered,
    # plus the f32 intermediates (h, h cast, y).
    est_resident = (2 * TB * Fp * isz_x          # x
                    + 2 * TB * Fp * isz_x        # out
                    + 2 * Fp * Fp * isz_w        # w1 + w2 (Buffered(1))
                    + 2 * Fp * 4                 # biases
                    + 3 * TB * Fp * 4)           # f32 intermediates
    use_ktiled = force_ktiled or (est_resident > int(0.8 * phys_vmem))

    if not use_ktiled:
        vmem_limit = int(min(max(int(est_resident * 1.25), 32 * _MIB),
                             int(0.9 * phys_vmem)))
        out = pl.pallas_call(
            functools.partial(_resident_kernel, compute_dtype=compute_dtype),
            out_shape=jax.ShapeDtypeStruct((Bp, Fp), x.dtype),
            grid_spec=pltpu.PrefetchScalarGridSpec(
                num_scalar_prefetch=0,
                grid=(Bp // TB,),
                in_specs=[
                    pl.BlockSpec((TB, Fp), lambda i: (i, 0)),   # x (pipelined)
                    pl.BlockSpec((Fp, Fp), lambda i: (0, 0),
                                 pipeline_mode=pl.Buffered(1)),  # w1 (resident)
                    pl.BlockSpec((1, Fp), lambda i: (0, 0),
                                 pipeline_mode=pl.Buffered(1)),  # b1
                    pl.BlockSpec((Fp, Fp), lambda i: (0, 0),
                                 pipeline_mode=pl.Buffered(1)),  # w2 (resident)
                    pl.BlockSpec((1, Fp), lambda i: (0, 0),
                                 pipeline_mode=pl.Buffered(1)),  # b2
                ],
                out_specs=pl.BlockSpec((TB, Fp), lambda i: (i, 0)),
            ),
            compiler_params=pltpu.CompilerParams(
                dimension_semantics=("parallel",),
                vmem_limit_bytes=vmem_limit,
            ),
        )(x_p, w1_p, b1_p, w2_p, b2_p)
    else:
        # K-tiled path: stream (TK, Fp) weight slabs, accumulate in f32 scratch.
        if tk is not None:
            TK = tk
        elif Fp % 512 == 0:
            TK = 512
        elif Fp % 256 == 0:
            TK = 256
        else:
            TK = 128
        TK = min(TK, Fp)
        assert Fp % TK == 0 and TK % 128 == 0
        n_k = Fp // TK

        est_kt = (2 * TB * Fp * isz_x            # x
                  + 2 * TB * Fp * isz_x          # out
                  + 2 * 2 * TK * Fp * isz_w      # w1 + w2 slabs (double-buffered)
                  + 2 * Fp * 4                   # biases
                  + 2 * TB * Fp * 4              # h_acc + y_acc scratch
                  + 2 * TB * TK * 4)             # slab temporaries
        vmem_limit = int(min(max(int(est_kt * 1.25), 32 * _MIB),
                             int(0.9 * phys_vmem)))

        out = pl.pallas_call(
            functools.partial(_ktiled_kernel, compute_dtype=compute_dtype,
                              tk=TK, n_k=n_k),
            out_shape=jax.ShapeDtypeStruct((Bp, Fp), x.dtype),
            grid_spec=pltpu.PrefetchScalarGridSpec(
                num_scalar_prefetch=0,
                grid=(Bp // TB, 2 * n_k),
                in_specs=[
                    pl.BlockSpec((TB, Fp), lambda i, k: (i, 0)),            # x (resident over k)
                    pl.BlockSpec((TK, Fp),
                                 lambda i, k: (jnp.minimum(k, n_k - 1), 0)),  # w1 slab
                    pl.BlockSpec((1, Fp), lambda i, k: (0, 0),
                                 pipeline_mode=pl.Buffered(1)),             # b1
                    pl.BlockSpec((TK, Fp),
                                 lambda i, k: (jnp.maximum(k - n_k, 0), 0)),  # w2 slab
                    pl.BlockSpec((1, Fp), lambda i, k: (0, 0),
                                 pipeline_mode=pl.Buffered(1)),             # b2
                ],
                out_specs=pl.BlockSpec((TB, Fp), lambda i, k: (i, 0)),
                scratch_shapes=[pltpu.VMEM((TB, Fp), jnp.float32),   # h accumulator
                                pltpu.VMEM((TB, Fp), jnp.float32)],  # y accumulator
            ),
            compiler_params=pltpu.CompilerParams(
                dimension_semantics=("parallel", "arbitrary"),
                vmem_limit_bytes=vmem_limit,
            ),
        )(x_p, w1_p, b1_p, w2_p, b2_p)

    if Bp == B and Fp == F:
        return out
    return out[:B, :F]


def residual_block(x, w1, b1, w2, b2, *, compute_dtype=jnp.bfloat16,
                   block_b=None, force_ktiled=False, tk=None):
    """Convenience wrapper (pads/casts weights per call; prefer prepare_params
    + residual_block_prepared for repeated inference)."""
    params = prepare_params(w1, b1, w2, b2, compute_dtype=compute_dtype)
    return residual_block_prepared(x, params, block_b=block_b,
                                   force_ktiled=force_ktiled, tk=tk)


# TODO(synk): optional int8 (v5e/v6e) / fp8 (v7x) weight paths would halve resident
# weight VMEM and raise MXU throughput; bf16 kept as the portable default.


# --------------------------------------------------------------------------- #
# Reference + tests
# --------------------------------------------------------------------------- #
def reference(x, w1, b1, w2, b2):
    h = jnp.maximum(x @ w1 + b1, 0.0)
    y = h @ w2 + b2
    return jnp.maximum(x + y, 0.0)


def _make_inputs(key, B, F):
    kx, kw1, kb1, kw2, kb2 = jax.random.split(key, 5)
    bound = 1.0 / jnp.sqrt(F)
    x = jax.random.normal(kx, (B, F), dtype=jnp.float32)
    w1 = jax.random.uniform(kw1, (F, F), jnp.float32, -bound, bound)  # [in, out]
    b1 = jax.random.uniform(kb1, (1, F), jnp.float32, -bound, bound)
    w2 = jax.random.uniform(kw2, (F, F), jnp.float32, -bound, bound)
    b2 = jax.random.uniform(kb2, (1, F), jnp.float32, -bound, bound)
    return x, w1, b1, w2, b2


if __name__ == "__main__":
    key = jax.random.PRNGKey(0)
    k1, k2 = jax.random.split(key)

    # Case 1: module-native small shape (B=8, F=32), exact f32 path, hoisted prep.
    x, w1, b1, w2, b2 = _make_inputs(k1, 8, 32)
    params_f32 = prepare_params(w1, b1, w2, b2, compute_dtype=jnp.float32)
    out = jax.block_until_ready(residual_block_prepared(x, params_f32))
    ref = reference(x, w1, b1, w2, b2)
    assert out.shape == (8, 32)
    assert jnp.allclose(out, ref, atol=1e-5, rtol=1e-5)

    # Case 1b: recommended bf16-MXU path (f32 accumulate), looser tolerance.
    out_bf = jax.block_until_ready(
        residual_block(x, w1, b1, w2, b2, compute_dtype=jnp.bfloat16))
    assert jnp.allclose(out_bf, ref, atol=5e-2, rtol=5e-2)

    # Case 2: non-aligned shape, multiple batch tiles + feature padding, resident path.
    xb, w1b, b1b, w2b, b2b = _make_inputs(k2, 48, 160)
    ref2 = reference(xb, w1b, b1b, w2b, b2b)
    out2 = jax.block_until_ready(
        residual_block(xb, w1b, b1b, w2b, b2b, block_b=16, compute_dtype=jnp.float32))
    assert out2.shape == (48, 160)
    assert jnp.allclose(out2, ref2, atol=1e-5, rtol=1e-5)

    # Case 3: same shape, forced K-tiled path (TK=128 -> 2 K-slabs per matmul).
    out3 = jax.block_until_ready(
        residual_block(xb, w1b, b1b, w2b, b2b, block_b=16,
                       compute_dtype=jnp.float32, force_ktiled=True, tk=128))
    assert out3.shape == (48, 160)
    assert jnp.allclose(out3, ref2, atol=1e-5, rtol=1e-5)

    print("KERNEL_OK")
</pallas_src>

<mosaic_0001>
module attributes {stable_mosaic.version = 11 : i64} {
  func.func @_resident_kernel(%arg0: i32, %arg1: memref<8x128xf32, #tpu.memory_space<vmem>>, %arg2: memref<128x128xf32, #tpu.memory_space<vmem>>, %arg3: memref<1x128xf32, #tpu.memory_space<vmem>>, %arg4: memref<128x128xf32, #tpu.memory_space<vmem>>, %arg5: memref<1x128xf32, #tpu.memory_space<vmem>>, %arg6: memref<8x128xf32, #tpu.memory_space<vmem>>) attributes {dimension_semantics = [#tpu.dimension_semantics<parallel>], iteration_bounds = array<i64: 1>, scalar_prefetch = 0 : i64, scratch_operands = 0 : i64, tpu.core_type = #tpu.core_type<tc>, window_params = [{transform_indices = @transform_0, window_bounds = array<i64: 8, 128>}, {pipeline_mode = #tpu.pipeline_mode<synchronous>, transform_indices = @transform_1, window_bounds = array<i64: 128, 128>}, {pipeline_mode = #tpu.pipeline_mode<synchronous>, transform_indices = @transform_2, window_bounds = array<i64: 1, 128>}, {pipeline_mode = #tpu.pipeline_mode<synchronous>, transform_indices = @transform_3, window_bounds = array<i64: 128, 128>}, {pipeline_mode = #tpu.pipeline_mode<synchronous>, transform_indices = @transform_4, window_bounds = array<i64: 1, 128>}, {transform_indices = @transform_5, window_bounds = array<i64: 8, 128>}]} {
    %c0 = arith.constant 0 : index
    %c0_0 = arith.constant 0 : index
    %0 = vector.load %arg1[%c0, %c0_0] : memref<8x128xf32, #tpu.memory_space<vmem>>, vector<8x128xf32>
    %c0_1 = arith.constant 0 : index
    %c0_2 = arith.constant 0 : index
    %1 = vector.load %arg2[%c0_1, %c0_2] : memref<128x128xf32, #tpu.memory_space<vmem>>, vector<128x128xf32>
    %cst = arith.constant dense<0.000000e+00> : vector<8x128xf32>
    %2 = tpu.matmul %0, %1, %cst {dimension_numbers = #tpu.dot_dimension_numbers<[1], [0], [0], [1], [0, 0, 1, 1], [], []>} : vector<8x128xf32>, vector<128x128xf32>, vector<8x128xf32> -> vector<8x128xf32>
    %c0_3 = arith.constant 0 : index
    %c0_4 = arith.constant 0 : index
    %3 = vector.load %arg3[%c0_3, %c0_4] : memref<1x128xf32, #tpu.memory_space<vmem>>, vector<1x128xf32>
    %4 = vector.broadcast %3 : vector<1x128xf32> to vector<8x128xf32>
    %5 = arith.addf %2, %4 : vector<8x128xf32>
    %cst_5 = arith.constant 0.000000e+00 : f32
    %6 = vector.broadcast %cst_5 : f32 to vector<8x128xf32>
    %7 = arith.maximumf %5, %6 : vector<8x128xf32>
    %c0_6 = arith.constant 0 : index
    %c0_7 = arith.constant 0 : index
    %8 = vector.load %arg4[%c0_6, %c0_7] : memref<128x128xf32, #tpu.memory_space<vmem>>, vector<128x128xf32>
    %cst_8 = arith.constant dense<0.000000e+00> : vector<8x128xf32>
    %9 = tpu.matmul %7, %8, %cst_8 {dimension_numbers = #tpu.dot_dimension_numbers<[1], [0], [0], [1], [0, 0, 1, 1], [], []>} : vector<8x128xf32>, vector<128x128xf32>, vector<8x128xf32> -> vector<8x128xf32>
    %c0_9 = arith.constant 0 : index
    %c0_10 = arith.constant 0 : index
    %10 = vector.load %arg1[%c0_9, %c0_10] : memref<8x128xf32, #tpu.memory_space<vmem>>, vector<8x128xf32>
    %11 = arith.addf %10, %9 : vector<8x128xf32>
    %c0_11 = arith.constant 0 : index
    %c0_12 = arith.constant 0 : index
    %12 = vector.load %arg5[%c0_11, %c0_12] : memref<1x128xf32, #tpu.memory_space<vmem>>, vector<1x128xf32>
    %13 = vector.broadcast %12 : vector<1x128xf32> to vector<8x128xf32>
    %14 = arith.addf %11, %13 : vector<8x128xf32>
    %cst_13 = arith.constant 0.000000e+00 : f32
    %15 = vector.broadcast %cst_13 : f32 to vector<8x128xf32>
    %16 = arith.maximumf %14, %15 : vector<8x128xf32>
    %c0_14 = arith.constant 0 : index
    %c0_15 = arith.constant 0 : index
    %17 = vector.load %arg6[%c0_14, %c0_15] : memref<8x128xf32, #tpu.memory_space<vmem>>, vector<8x128xf32>
    tpu.vector_store %arg6[%c0_14, %c0_15], %16 {strides = array<i32>} : memref<8x128xf32, #tpu.memory_space<vmem>>, vector<8x128xf32>,
    return
  }
  func.func @transform_0(%arg0: i32) -> (i32, i32) {
    %c0_i32 = arith.constant 0 : i32
    %c0_i32_0 = arith.constant 0 : i32
    return %arg0, %c0_i32 : i32, i32
  }
  func.func @transform_1(%arg0: i32) -> (i32, i32) {
    %c0_i32 = arith.constant 0 : i32
    %c0_i32_0 = arith.constant 0 : i32
    %c0_i32_1 = arith.constant 0 : i32
    return %c0_i32, %c0_i32_0 : i32, i32
  }
  func.func @transform_2(%arg0: i32) -> (i32, i32) {
    %c0_i32 = arith.constant 0 : i32
    %c0_i32_0 = arith.constant 0 : i32
    %c0_i32_1 = arith.constant 0 : i32
    return %c0_i32, %c0_i32_0 : i32, i32
  }
  func.func @transform_3(%arg0: i32) -> (i32, i32) {
    %c0_i32 = arith.constant 0 : i32
    %c0_i32_0 = arith.constant 0 : i32
    %c0_i32_1 = arith.constant 0 : i32
    return %c0_i32, %c0_i32_0 : i32, i32
  }
  func.func @transform_4(%arg0: i32) -> (i32, i32) {
    %c0_i32 = arith.constant 0 : i32
    %c0_i32_0 = arith.constant 0 : i32
    %c0_i32_1 = arith.constant 0 : i32
    return %c0_i32, %c0_i32_0 : i32, i32
  }
  func.func @transform_5(%arg0: i32) -> (i32, i32) {
    %c0_i32 = arith.constant 0 : i32
    %c0_i32_0 = arith.constant 0 : i32
    return %arg0, %c0_i32 : i32, i32
  }
}

</mosaic_0001>

<bundles_post_ra>
// kernel: tpu_custom_call.1
= control target key start
LH: loop header
LB: loop body
LE: loop exit
PB: predicated region body
PF: predicated region fallthrough
CT: control target
= control target key end

     0   :  { %10 = vsyncpa [#allocation3], 0  ;;  %s334_s0 = inlined_call_operand.hbm [shape: f32[8,128], index: 0, kind: input, shape index: {}]   ;;  %s335_s1 = inlined_call_operand.hbm [shape: f32[128,128], index: 1, kind: input, shape index: {}]   ;;  %s336_s2 = inlined_call_operand.vmem [shape: f32[1,128], index: 2, kind: input, shape index: {}]   ;;  %s337_s3 = inlined_call_operand.hbm [shape: f32[128,128], index: 3, kind: input, shape index: {}]   ;;  %s338_s4 = inlined_call_operand.vmem [shape: f32[1,128], index: 4, kind: input, shape index: {}]   ;;  %s339_s5 = inlined_call_operand.hbm [shape: f32[8,128], index: 5, kind: output, shape index: {}]  }
   0x1   :  { %11 = vsyncpa [#allocation6], 0  ;;  %s28_s20 = sshll.u32 %s335_s1, 4  ;;  %s29_s20 = int_to_ptr.hbm [resolvable:$true] %s28_s20 }
   0x2   :  { %12 = vsyncpa [#allocation4], 0  ;;  %s280_s21 = smov [#allocation5]   ;;  %s18_s25 = sshll.u32 %s334_s0, 4  ;;  %s19_s25 = int_to_ptr.hbm [resolvable:$true] %s18_s25 }
   0x3   :  { %s30_s22 = sshll.u32 %s280_s21, 4  ;;  %s281_s26 = smov 128   ;;  %s31_s22 = int_to_ptr.vmem [resolvable:$true] %s30_s22 }
   0x4   :  { %s282_s27 = smov 8   ;;  %s283_s28 = smov [#allocation2]  }
   0x5   :  { %36 = dma.hbm_to_vmem [thread:$0]  %s29_s20, 2048, %s31_s22, [#allocation6], %s281_s26, %s281_s26, %s282_s27  }
   0x6   :  { %s20_s29 = sshll.u32 %s283_s28, 4  ;;  %s43_s7 = sshll.u32 %s337_s3, 4  ;;  %s21_s29 = int_to_ptr.vmem [resolvable:$true] %s20_s29  ;;  %s44_s7 = int_to_ptr.hbm [resolvable:$true] %s43_s7 }
   0x7   :  { %23 = dma.hbm_to_vmem [thread:$0]  %s19_s25, 128, %s21_s29, [#allocation3]  }
   0x8   :  { %s284_s1 = smov [#allocation7]  }
   0x9   :  { %s45_s8 = sshll.u32 %s284_s1, 4  ;;  %s46_s8 = int_to_ptr.vmem [resolvable:$true] %s45_s8 }
   0xa   :  { %51 = dma.hbm_to_vmem [thread:$0]  %s44_s7, 2048, %s46_s8, [#allocation6], %s281_s26, %s281_s26, %s282_s27  }
   0xb   :  { %274 = dma.done.wait [#allocation3], 128  }
   0xc   :  { %275 = vsyncadd [#allocation3], 4294967168 }
   0xd   :  { %276 = dma.done.wait [#allocation6], 4096  }
   0xe   :  { %277 = vsyncadd [#allocation6], 4294963200  ;;  %v82_v0 = vld [vmem:[#allocation5 + $0x78] sm:$0xff]  ;;  %v81_v1 = vld [vmem:[#allocation5 + $0x70] sm:$0xff]  ;;  %s285_s11 = smov [#allocation8]   ;;  %s159_s15 = sshll.u32 %s339_s5, 4  ;;  %s160_s15 = int_to_ptr.hbm [resolvable:$true] %s159_s15 }
   0xf   :  { %87 = vmatpush.msra.mxu0 %v82_v0  ;;  %v80_v2 = vld [vmem:[#allocation5 + $0x68] sm:$0xff]  ;;  %v79_v3 = vld [vmem:[#allocation5 + $0x60] sm:$0xff]  ;;  %v123_v4 = vld [vmem:[#allocation7 + $0x78] sm:$0xff]  ;;  %s157_s12 = sshll.u32 %s285_s11, 4  ;;  %s158_s12 = int_to_ptr.vmem [resolvable:$true] %s157_s12 }
  0x10   :  { %v78_v5 = vld [vmem:[#allocation5 + $0x58] sm:$0xff]  ;;  %124 = vmatpush.msra.mxu1 %v123_v4  ;;  %v122_v6 = vld [vmem:[#allocation7 + $0x70] sm:$0xff]  ;;  %v121_v7 = vld [vmem:[#allocation7 + $0x68] sm:$0xff] }
  0x11   :  { %88 = vmatpush.msra.mxu0 %v81_v1  ;;  %v77_v8 = vld [vmem:[#allocation5 + $0x50] sm:$0xff]  ;;  %v120_v9 = vld [vmem:[#allocation7 + $0x60] sm:$0xff]  ;;  %v76_v10 = vld [vmem:[#allocation5 + $0x48] sm:$0xff] }
  0x12   :  { %125 = vmatpush.msra.mxu1 %v122_v6  ;;  %v119_v11 = vld [vmem:[#allocation7 + $0x58] sm:$0xff]  ;;  %v75_v12 = vld [vmem:[#allocation5 + $0x40] sm:$0xff]  ;;  %v118_v13 = vld [vmem:[#allocation7 + $0x50] sm:$0xff] }
  0x13   :  { %89 = vmatpush.msra.mxu0 %v80_v2  ;;  %v74_v14 = vld [vmem:[#allocation5 + $0x38] sm:$0xff]  ;;  %v117_v15 = vld [vmem:[#allocation7 + $0x48] sm:$0xff]  ;;  %v73_v16 = vld [vmem:[#allocation5 + $0x30] sm:$0xff] }
  0x14   :  { %126 = vmatpush.msra.mxu1 %v121_v7  ;;  %v116_v17 = vld [vmem:[#allocation7 + $0x40] sm:$0xff]  ;;  %v72_v18 = vld [vmem:[#allocation5 + $0x28] sm:$0xff]  ;;  %v115_v19 = vld [vmem:[#allocation7 + $0x38] sm:$0xff] }
  0x15   :  { %90 = vmatpush.msra.mxu0 %v79_v3  ;;  %v71_v20 = vld [vmem:[#allocation5 + $0x20] sm:$0xff]  ;;  %v114_v21 = vld [vmem:[#allocation7 + $0x30] sm:$0xff]  ;;  %v70_v22 = vld [vmem:[#allocation5 + $0x18] sm:$0xff] }
  0x16   :  { %127 = vmatpush.msra.mxu1 %v120_v9  ;;  %v113_v23 = vld [vmem:[#allocation7 + $0x28] sm:$0xff]  ;;  %v69_v24 = vld [vmem:[#allocation5 + $0x10] sm:$0xff]  ;;  %v112_v25 = vld [vmem:[#allocation7 + $0x20] sm:$0xff] }
  0x17   :  { %91 = vmatpush.msra.mxu0 %v78_v5  ;;  %v68_v26 = vld [vmem:[#allocation5 + $0x8] sm:$0xff]  ;;  %v111_v27 = vld [vmem:[#allocation7 + $0x18] sm:$0xff]  ;;  %v67_v28 = vld [vmem:[#allocation5] sm:$0xff] }
  0x18   :  { %128 = vmatpush.msra.mxu1 %v119_v11  ;;  %v66_v29 = vld [vmem:[#allocation2] sm:$0xff]  ;;  %v110_v30 = vld [vmem:[#allocation7 + $0x10] sm:$0xff]  ;;  %v109_v31 = vld [vmem:[#allocation7 + $0x8] sm:$0xff] }
  0x19   :  { %92 = vmatpush.msra.mxu0 %v77_v8  ;;  %v108_v32 = vld [vmem:[#allocation7] sm:$0xff]  ;;  %v176_v33 = vld [vmem:[%s336_s2] ss:$0 sm:$0xff] }
  0x1a   :  { %129 = vmatpush.msra.mxu1 %v118_v13  ;;  %v177_v37 = vld [vmem:[%s338_s4] ss:$0 sm:$0xff] }
  0x1b   :  { %93 = vmatpush.msra.mxu0 %v76_v10 }
  0x1c   :  { %130 = vmatpush.msra.mxu1 %v117_v15 }
  0x1d   :  { %94 = vmatpush.msra.mxu0 %v75_v12 }
  0x1e   :  { %131 = vmatpush.msra.mxu1 %v116_v17 }
  0x1f   :  { %95 = vmatpush.msra.mxu0 %v74_v14 }
  0x20   :  { %132 = vmatpush.msra.mxu1 %v115_v19 }
  0x21   :  { %96 = vmatpush.msra.mxu0 %v73_v16 }
  0x22   :  { %133 = vmatpush.msra.mxu1 %v114_v21 }
  0x23   :  { %97 = vmatpush.msra.mxu0 %v72_v18 }
  0x24   :  { %134 = vmatpush.msra.mxu1 %v113_v23 }
  0x25   :  { %98 = vmatpush.msra.mxu0 %v71_v20 }
  0x26   :  { %135 = vmatpush.msra.mxu1 %v112_v25 }
  0x27   :  { %99 = vmatpush.msra.mxu0 %v70_v22 }
  0x28   :  { %136 = vmatpush.msra.mxu1 %v111_v27 }
  0x29   :  { %100 = vmatpush.msra.mxu0 %v69_v24 }
  0x2a   :  { %137 = vmatpush.msra.mxu1 %v110_v30 }
  0x2b   :  { %101 = vmatpush.msra.mxu0 %v68_v26 }
  0x2c   :  { %138 = vmatpush.msra.mxu1 %v109_v31 }
  0x2d   :  { %102 = vmatpush.msra.mxu0 %v67_v28 }
  0x2e   :  { %103 = vmatmul.f32.vlgmr.msra.gmra.mxu0 %v66_v29  ;;  %139 = vmatpush.msra.mxu1 %v108_v32 }
  0xab   :  { %v104_v34 = vpop.f32.mrf.mxu0 }
  0xac   :  { %v105_v35 = vadd.f32 %v176_v33, %v104_v34 }
  0xae   :  { %v107_v36 = vmax.f32 %v105_v35, 0.0 }
  0xb0   :  { %140 = vmatmul.f32.vlgmr.msra.gmra.mxu1 %v107_v36 }
 0x12d   :  { %v141_v38 = vpop.f32.mrf.mxu1 }
 0x12e   :  { %v144_v39 = vadd.f32 %v141_v38, %v66_v29 }
 0x130   :  { %v149_v40 = vadd.f32 %v177_v37, %v144_v39 }
 0x132   :  { %v150_v41 = vmax.f32 %v149_v40, 0.0 }
 0x134   :  { %151 = vst [vmem:[#allocation8] sm:$0xff] %v150_v41 }
 0x135   :  { %162 = dma.vmem_to_hbm [thread:$0]  %s158_s12, 128, %s160_s15, [#allocation4]  }
 0x136   :  { %278 = dma.done.wait [#allocation4], 128  }
 0x137   :  { %279 = vsyncadd [#allocation4], 4294967168 }
 0x138   :  { %167 = vsyncpa [#allocation3], 1 }
 0x139   :  { %168 = vsyncpa [#allocation6], 1 }
 0x13a   :  { %169 = vsyncpa [#allocation4], 1 }

</bundles_post_ra>
